<compile_context>
chip_gen: v7x
topology: tpu7x:2x2x1
jax: 0.10.0
libtpu: 0.0.40
codegen_flags: <defaults>
</compile_context>

<pallas_src>
import functools
import math

import jax
import jax.numpy as jnp
from jax.experimental import pallas as pl
from jax.experimental.pallas import tpu as pltpu


# ----------------------------------------------------------------------------
# Tiling helper: largest tile <= target that divides dim and respects the
# (8, 128) granularity; fall back to the full dim (always legal as a block).
# ----------------------------------------------------------------------------
def _pick_tile(dim: int, target: int, granule: int) -> int:
    if dim <= target:
        return dim
    t = (target // granule) * granule
    while t >= granule:
        if dim % t == 0:
            return t
        t -= granule
    return dim


# ----------------------------------------------------------------------------
# Dense: out = act(x @ w + b)
# ----------------------------------------------------------------------------
def _dense_kernel(x_ref, w_ref, b_ref, o_ref, acc_ref, *, activation, n_k):
    @pl.when(pl.program_id(2) == 0)
    def _():
        acc_ref[...] = jnp.zeros_like(acc_ref)

    acc_ref[...] += jnp.dot(
        x_ref[...], w_ref[...], preferred_element_type=jnp.float32
    )

    @pl.when(pl.program_id(2) == n_k - 1)
    def _():
        out = acc_ref[...] + b_ref[...]
        if activation == "relu":
            out = jnp.maximum(out, 0.0)
        elif activation == "gelu":
            # TODO(synk): tanh-approx GELU; PyTorch default "gelu" uses erf.
            out = 0.5 * out * (
                1.0 + jnp.tanh(0.7978845608028654 * (out + 0.044715 * out * out * out))
            )
        o_ref[...] = out.astype(o_ref.dtype)


def dense_pallas(x, w, b, *, activation=None):
    """x: (M, K) f32, w: (K, N) f32, b: (N,) f32 -> (M, N) f32."""
    m, k = x.shape
    k2, n = w.shape
    assert k == k2
    tm = _pick_tile(m, 256, 8)
    tn = _pick_tile(n, 256, 128)
    tk = _pick_tile(k, 512, 128)
    grid = (m // tm, n // tn, k // tk)
    kernel = functools.partial(_dense_kernel, activation=activation, n_k=grid[2])
    return pl.pallas_call(
        kernel,
        out_shape=jax.ShapeDtypeStruct((m, n), x.dtype),
        grid_spec=pltpu.PrefetchScalarGridSpec(
            num_scalar_prefetch=0,
            grid=grid,
            in_specs=[
                pl.BlockSpec((tm, tk), lambda i, j, kk: (i, kk)),
                pl.BlockSpec((tk, tn), lambda i, j, kk: (kk, j)),
                pl.BlockSpec((1, tn), lambda i, j, kk: (0, j)),
            ],
            out_specs=pl.BlockSpec((tm, tn), lambda i, j, kk: (i, j)),
            scratch_shapes=[pltpu.VMEM((tm, tn), jnp.float32)],
        ),
        compiler_params=pltpu.CompilerParams(
            dimension_semantics=("parallel", "parallel", "arbitrary")
        ),
    )(x, w, b.reshape(1, n))


# ----------------------------------------------------------------------------
# Multi-head self-attention core: one (batch, head) block per grid step.
# ----------------------------------------------------------------------------
def _mha_kernel(q_ref, k_ref, v_ref, am_ref, pm_ref, o_ref, *, scale):
    q = q_ref[...][0, 0]            # (S, Dh)
    k = k_ref[...][0, 0]            # (S, Dh)
    v = v_ref[...][0, 0]            # (S, Dh)
    s = jnp.dot(q, k.T, preferred_element_type=jnp.float32) * scale  # (S, S)
    s = s + am_ref[...] + pm_ref[...].reshape(1, -1)                 # additive biases
    m = jnp.max(s, axis=-1, keepdims=True)
    p = jnp.exp(s - m)
    l = jnp.sum(p, axis=-1, keepdims=True)
    o = jnp.dot(p, v, preferred_element_type=jnp.float32) / l        # (S, Dh)
    o_ref[...] = o[None, None].astype(o_ref.dtype)


def mha_pallas(q, k, v, attn_bias, pad_bias, *, scale):
    """q,k,v: (B, H, S, Dh); attn_bias: (S, S); pad_bias: (B, S)."""
    b, h, s, dh = q.shape
    pad3 = pad_bias.reshape(b, 1, s)
    # TODO(synk): for long sequences, switch to a flash-attention style grid
    # (K/V tiles along an "arbitrary" axis with online softmax scratch).
    return pl.pallas_call(
        functools.partial(_mha_kernel, scale=scale),
        out_shape=jax.ShapeDtypeStruct((b, h, s, dh), q.dtype),
        grid_spec=pltpu.PrefetchScalarGridSpec(
            num_scalar_prefetch=0,
            grid=(b, h),
            in_specs=[
                pl.BlockSpec((1, 1, s, dh), lambda bi, hi: (bi, hi, 0, 0)),
                pl.BlockSpec((1, 1, s, dh), lambda bi, hi: (bi, hi, 0, 0)),
                pl.BlockSpec((1, 1, s, dh), lambda bi, hi: (bi, hi, 0, 0)),
                pl.BlockSpec((s, s), lambda bi, hi: (0, 0)),
                pl.BlockSpec((1, 1, s), lambda bi, hi: (bi, 0, 0)),
            ],
            out_specs=pl.BlockSpec((1, 1, s, dh), lambda bi, hi: (bi, hi, 0, 0)),
        ),
        compiler_params=pltpu.CompilerParams(
            dimension_semantics=("parallel", "parallel")
        ),
    )(q, k, v, attn_bias, pad3)


# ----------------------------------------------------------------------------
# Fused residual add + LayerNorm.
# ----------------------------------------------------------------------------
def _add_ln_kernel(x_ref, y_ref, g_ref, b_ref, o_ref, *, eps):
    z = x_ref[...].astype(jnp.float32) + y_ref[...].astype(jnp.float32)
    mean = jnp.mean(z, axis=-1, keepdims=True)
    cent = z - mean
    var = jnp.mean(cent * cent, axis=-1, keepdims=True)
    normed = cent * jax.lax.rsqrt(var + eps)
    o_ref[...] = (normed * g_ref[...] + b_ref[...]).astype(o_ref.dtype)


def add_layernorm_pallas(x, y, gamma, beta, *, eps=1e-5):
    m, e = x.shape
    tm = _pick_tile(m, 512, 8)
    grid = (m // tm,)
    return pl.pallas_call(
        functools.partial(_add_ln_kernel, eps=eps),
        out_shape=jax.ShapeDtypeStruct((m, e), x.dtype),
        grid_spec=pltpu.PrefetchScalarGridSpec(
            num_scalar_prefetch=0,
            grid=grid,
            in_specs=[
                pl.BlockSpec((tm, e), lambda i: (i, 0)),
                pl.BlockSpec((tm, e), lambda i: (i, 0)),
                pl.BlockSpec((1, e), lambda i: (0, 0)),
                pl.BlockSpec((1, e), lambda i: (0, 0)),
            ],
            out_specs=pl.BlockSpec((tm, e), lambda i: (i, 0)),
        ),
        compiler_params=pltpu.CompilerParams(dimension_semantics=("parallel",)),
    )(x, y, gamma.reshape(1, e), beta.reshape(1, e))


# ----------------------------------------------------------------------------
# Full forward pass of _TransformerEncoderLayer.
# ----------------------------------------------------------------------------
_NEG = jnp.float32(-1e30)  # additive "masked" bias (finite to avoid inf-inf NaNs)


def transformer_encoder_layer_forward(xfmr_input, params, *, nheads, activation,
                                      attn_mask_flag, padding_mask_flag, eps=1e-5):
    src, attn_mask, padding_mask = xfmr_input
    s, b, e = src.shape
    dh = e // nheads
    x = src.reshape(s * b, e).astype(jnp.float32)

    # ---- self-attention -----------------------------------------------------
    qkv = dense_pallas(x, params["in_proj_w"].T, params["in_proj_b"])
    q, k, v = jnp.split(qkv, 3, axis=-1)

    def to_heads(t):
        return t.reshape(s, b, nheads, dh).transpose(1, 2, 0, 3)  # (B, H, S, Dh)

    qh, kh, vh = to_heads(q), to_heads(k), to_heads(v)

    if attn_mask_flag and attn_mask is not None:
        attn_bias = jnp.where(attn_mask, _NEG, jnp.float32(0.0))
    else:
        attn_bias = jnp.zeros((s, s), jnp.float32)
    if padding_mask_flag and padding_mask is not None:
        pad_bias = jnp.where(padding_mask, _NEG, jnp.float32(0.0))
    else:
        pad_bias = jnp.zeros((b, s), jnp.float32)

    attn = mha_pallas(qh, kh, vh, attn_bias, pad_bias, scale=1.0 / math.sqrt(dh))
    attn = attn.transpose(2, 0, 1, 3).reshape(s * b, e)
    attn_out = dense_pallas(attn, params["out_proj_w"].T, params["out_proj_b"])

    # TODO(synk): dropout omitted (inference semantics / dropout prob treated as 0).
    h1 = add_layernorm_pallas(x, attn_out, params["ln1_g"], params["ln1_b"], eps=eps)

    # ---- feed-forward -------------------------------------------------------
    ff = dense_pallas(h1, params["lin1_w"].T, params["lin1_b"], activation=activation)
    ff = dense_pallas(ff, params["lin2_w"].T, params["lin2_b"])
    out = add_layernorm_pallas(h1, ff, params["ln2_g"], params["ln2_b"], eps=eps)

    return out.reshape(s, b, e), attn_mask, padding_mask


# ----------------------------------------------------------------------------
# Pure-JAX reference (same math, HIGHEST-precision matmuls) for validation.
# ----------------------------------------------------------------------------
def reference_forward(src, attn_mask, padding_mask, params, *, nheads, activation,
                      attn_mask_flag, padding_mask_flag, eps=1e-5):
    hp = jax.lax.Precision.HIGHEST
    s, b, e = src.shape
    dh = e // nheads
    x = src.reshape(s * b, e).astype(jnp.float32)
    qkv = jnp.dot(x, params["in_proj_w"].T, precision=hp) + params["in_proj_b"]
    q, k, v = jnp.split(qkv, 3, axis=-1)

    def to_heads(t):
        return t.reshape(s, b, nheads, dh).transpose(1, 2, 0, 3)

    qh, kh, vh = to_heads(q), to_heads(k), to_heads(v)
    scores = jnp.einsum("bhqd,bhkd->bhqk", qh, kh, precision=hp) / math.sqrt(dh)
    if attn_mask_flag and attn_mask is not None:
        scores = scores + jnp.where(attn_mask, _NEG, jnp.float32(0.0))
    if padding_mask_flag and padding_mask is not None:
        scores = scores + jnp.where(padding_mask, _NEG, jnp.float32(0.0))[:, None, None, :]
    m = jnp.max(scores, axis=-1, keepdims=True)
    p = jnp.exp(scores - m)
    p = p / jnp.sum(p, axis=-1, keepdims=True)
    attn = jnp.einsum("bhqk,bhkd->bhqd", p, vh, precision=hp)
    attn = attn.transpose(2, 0, 1, 3).reshape(s * b, e)
    attn_out = jnp.dot(attn, params["out_proj_w"].T, precision=hp) + params["out_proj_b"]

    def ln(z, g, bb):
        mean = jnp.mean(z, -1, keepdims=True)
        c = z - mean
        var = jnp.mean(c * c, -1, keepdims=True)
        return c * jax.lax.rsqrt(var + eps) * g + bb

    h1 = ln(x + attn_out, params["ln1_g"], params["ln1_b"])
    ff = jnp.dot(h1, params["lin1_w"].T, precision=hp) + params["lin1_b"]
    if activation == "relu":
        ff = jnp.maximum(ff, 0.0)
    else:
        ff = 0.5 * ff * (1.0 + jnp.tanh(0.7978845608028654 * (ff + 0.044715 * ff ** 3)))
    ff = jnp.dot(ff, params["lin2_w"].T, precision=hp) + params["lin2_b"]
    out = ln(h1 + ff, params["ln2_g"], params["ln2_b"])
    return out.reshape(s, b, e)


if __name__ == "__main__":
    # Small shapes consistent with the module: seq=8, batch=2, emb=32,
    # 4 attention heads, feedforward dim 64, relu activation.
    S, B, E, H, F = 8, 2, 32, 4, 64
    ACT = "relu"

    key = jax.random.PRNGKey(0)
    keys = jax.random.split(key, 12)
    params = {
        "in_proj_w": 0.2 * jax.random.normal(keys[0], (3 * E, E), jnp.float32),
        "in_proj_b": 0.1 * jax.random.normal(keys[1], (3 * E,), jnp.float32),
        "out_proj_w": 0.2 * jax.random.normal(keys[2], (E, E), jnp.float32),
        "out_proj_b": 0.1 * jax.random.normal(keys[3], (E,), jnp.float32),
        "lin1_w": 0.2 * jax.random.normal(keys[4], (F, E), jnp.float32),
        "lin1_b": 0.1 * jax.random.normal(keys[5], (F,), jnp.float32),
        "lin2_w": 0.2 * jax.random.normal(keys[6], (E, F), jnp.float32),
        "lin2_b": 0.1 * jax.random.normal(keys[7], (E,), jnp.float32),
        "ln1_g": 1.0 + 0.1 * jax.random.normal(keys[8], (E,), jnp.float32),
        "ln1_b": 0.1 * jax.random.normal(keys[9], (E,), jnp.float32),
        "ln2_g": 1.0 + 0.1 * jax.random.normal(keys[10], (E,), jnp.float32),
        "ln2_b": 0.1 * jax.random.normal(keys[11], (E,), jnp.float32),
    }

    k_src, k_pad = jax.random.split(jax.random.PRNGKey(0))
    src = jax.random.normal(k_src, (S, B, E), jnp.float32)
    # Causal-style bool attn mask (True = not allowed to attend).
    attn_mask = jnp.triu(jnp.ones((S, S), jnp.bool_), k=1)
    padding_mask = jax.random.bernoulli(k_pad, 0.2, (B, S))
    padding_mask = padding_mask.at[:, 0].set(False)  # keep first key visible

    out, out_attn, out_pad = transformer_encoder_layer_forward(
        (src, attn_mask, padding_mask), params,
        nheads=H, activation=ACT, attn_mask_flag=True, padding_mask_flag=True,
    )
    jax.block_until_ready(out)

    ref = reference_forward(
        src, attn_mask, padding_mask, params,
        nheads=H, activation=ACT, attn_mask_flag=True, padding_mask_flag=True,
    )

    assert out.shape == (S, B, E) and out.dtype == jnp.float32
    assert jnp.allclose(out, ref, atol=1e-3, rtol=1e-3), float(jnp.max(jnp.abs(out - ref)))
    assert jnp.array_equal(out_attn, attn_mask)
    assert jnp.array_equal(out_pad, padding_mask)

    print("KERNEL_OK")
</pallas_src>

<mosaic_0001>
module attributes {stable_mosaic.version = 11 : i64} {
  func.func @_dense_kernel(%arg0: i32, %arg1: i32, %arg2: i32, %arg3: memref<16x32xf32, #tpu.memory_space<vmem>>, %arg4: memref<32x96xf32, #tpu.memory_space<vmem>>, %arg5: memref<1x96xf32, #tpu.memory_space<vmem>>, %arg6: memref<16x96xf32, #tpu.memory_space<vmem>>, %arg7: memref<16x96xf32, #tpu.memory_space<vmem>>) attributes {dimension_semantics = [#tpu.dimension_semantics<parallel>, #tpu.dimension_semantics<parallel>, #tpu.dimension_semantics<arbitrary>], iteration_bounds = array<i64: 1, 1, 1>, scalar_prefetch = 0 : i64, scratch_operands = 1 : i64, tpu.core_type = #tpu.core_type<tc>, window_params = [{transform_indices = @transform_0, window_bounds = array<i64: 16, 32>}, {transform_indices = @transform_1, window_bounds = array<i64: 32, 96>}, {transform_indices = @transform_2, window_bounds = array<i64: 1, 96>}, {transform_indices = @transform_3, window_bounds = array<i64: 16, 96>}]} {
    %c0_i32 = arith.constant 0 : i32
    %0 = arith.cmpi eq, %arg2, %c0_i32 : i32
    %1 = arith.extui %0 : i1 to i32
    %c0_i32_0 = arith.constant 0 : i32
    %2 = arith.cmpi ne, %1, %c0_i32_0 : i32
    scf.if %2 {
      %cst_10 = arith.constant 0.000000e+00 : f32
      %12 = vector.broadcast %cst_10 : f32 to vector<16x96xf32>
      %c0_11 = arith.constant 0 : index
      %c0_12 = arith.constant 0 : index
      %13 = vector.load %arg7[%c0_11, %c0_12] : memref<16x96xf32, #tpu.memory_space<vmem>>, vector<16x96xf32>
      tpu.vector_store %arg7[%c0_11, %c0_12], %12 {strides = array<i32>} : memref<16x96xf32, #tpu.memory_space<vmem>>, vector<16x96xf32>,
    } else {
    }
    %c0 = arith.constant 0 : index
    %c0_1 = arith.constant 0 : index
    %3 = vector.load %arg7[%c0, %c0_1] : memref<16x96xf32, #tpu.memory_space<vmem>>, vector<16x96xf32>
    %c0_2 = arith.constant 0 : index
    %c0_3 = arith.constant 0 : index
    %4 = vector.load %arg3[%c0_2, %c0_3] : memref<16x32xf32, #tpu.memory_space<vmem>>, vector<16x32xf32>
    %c0_4 = arith.constant 0 : index
    %c0_5 = arith.constant 0 : index
    %5 = vector.load %arg4[%c0_4, %c0_5] : memref<32x96xf32, #tpu.memory_space<vmem>>, vector<32x96xf32>
    %cst = arith.constant dense<0.000000e+00> : vector<16x96xf32>
    %6 = tpu.matmul %4, %5, %cst {dimension_numbers = #tpu.dot_dimension_numbers<[1], [0], [0], [1], [0, 0, 1, 1], [], []>} : vector<16x32xf32>, vector<32x96xf32>, vector<16x96xf32> -> vector<16x96xf32>
    %7 = arith.addf %3, %6 : vector<16x96xf32>
    %c0_6 = arith.constant 0 : index
    %c0_7 = arith.constant 0 : index
    %8 = vector.load %arg7[%c0_6, %c0_7] : memref<16x96xf32, #tpu.memory_space<vmem>>, vector<16x96xf32>
    tpu.vector_store %arg7[%c0_6, %c0_7], %7 {strides = array<i32>} : memref<16x96xf32, #tpu.memory_space<vmem>>, vector<16x96xf32>,
    %c0_i32_8 = arith.constant 0 : i32
    %9 = arith.cmpi eq, %arg2, %c0_i32_8 : i32
    %10 = arith.extui %9 : i1 to i32
    %c0_i32_9 = arith.constant 0 : i32
    %11 = arith.cmpi ne, %10, %c0_i32_9 : i32
    scf.if %11 {
      %c0_10 = arith.constant 0 : index
      %c0_11 = arith.constant 0 : index
      %12 = vector.load %arg7[%c0_10, %c0_11] : memref<16x96xf32, #tpu.memory_space<vmem>>, vector<16x96xf32>
      %c0_12 = arith.constant 0 : index
      %c0_13 = arith.constant 0 : index
      %13 = vector.load %arg5[%c0_12, %c0_13] : memref<1x96xf32, #tpu.memory_space<vmem>>, vector<1x96xf32>
      %14 = vector.broadcast %13 : vector<1x96xf32> to vector<16x96xf32>
      %15 = arith.addf %12, %14 : vector<16x96xf32>
      %c0_14 = arith.constant 0 : index
      %c0_15 = arith.constant 0 : index
      %16 = vector.load %arg6[%c0_14, %c0_15] : memref<16x96xf32, #tpu.memory_space<vmem>>, vector<16x96xf32>
      tpu.vector_store %arg6[%c0_14, %c0_15], %15 {strides = array<i32>} : memref<16x96xf32, #tpu.memory_space<vmem>>, vector<16x96xf32>,
    } else {
    }
    return
  }
  func.func @transform_0(%arg0: i32, %arg1: i32, %arg2: i32) -> (i32, i32) {
    %c0_i32 = arith.constant 0 : i32
    return %arg0, %arg2 : i32, i32
  }
  func.func @transform_1(%arg0: i32, %arg1: i32, %arg2: i32) -> (i32, i32) {
    %c0_i32 = arith.constant 0 : i32
    return %arg2, %arg1 : i32, i32
  }
  func.func @transform_2(%arg0: i32, %arg1: i32, %arg2: i32) -> (i32, i32) {
    %c0_i32 = arith.constant 0 : i32
    %c0_i32_0 = arith.constant 0 : i32
    return %c0_i32, %arg1 : i32, i32
  }
  func.func @transform_3(%arg0: i32, %arg1: i32, %arg2: i32) -> (i32, i32) {
    %c0_i32 = arith.constant 0 : i32
    return %arg0, %arg1 : i32, i32
  }
}

</mosaic_0001>

<bundles_post_ra>
// kernel: tpu_custom_call.1
= control target key start
LH: loop header
LB: loop body
LE: loop exit
PB: predicated region body
PF: predicated region fallthrough
CT: control target
= control target key end

     0   :  { %8 = vsyncpa [#allocation4], 0  ;;  %s365_s0 = inlined_call_operand.hbm [shape: f32[16,32], index: 0, kind: input, shape index: {}]   ;;  %s366_s1 = inlined_call_operand.hbm [shape: f32[32,96], index: 1, kind: input, shape index: {}]   ;;  %s367_s2 = inlined_call_operand.vmem [shape: f32[1,96], index: 2, kind: input, shape index: {}]   ;;  %s368_s3 = inlined_call_operand.hbm [shape: f32[16,96], index: 3, kind: output, shape index: {}]  }
   0x1   :  { %9 = vsyncpa [#allocation7], 0 }
   0x2   :  { %10 = vsyncpa [#allocation5], 0  ;;  %s285_s12 = smov [#allocation3]   ;;  %s213_s16 = scalar_lea.hbm %s365_s0, 256 }
   0x3   :  { %s16_s13 = sshll.u32 %s285_s12, 4  ;;  %p214_p0 = scmp.ne.s32.totalorder %s365_s0, %s213_s16  ;;  %s17_s13 = int_to_ptr.vmem [resolvable:$true] %s16_s13 }
   0x4   :  { %p217_p1 = scmp.lt.u32.totalorder %s213_s16, %s365_s0 }
   0x6   :  { %p219_p2 = pnand %p217_p1, %p214_p0 }
   0x8   :  { %222 = shalt.err (!%p219_p2)
}
   0x9   :  { %s223_s21 = scalar_lea.vmem %s17_s13, 256  ;;  %p228_p4 = scmp.lt.s32.totalorder %s17_s13, %s17_s13 }
   0xa   :  { %p224_p3 = scmp.ne.s32.totalorder %s17_s13, %s223_s21  ;;  %p229_p5 = scmp.lt.s32.totalorder %s223_s21, %s223_s21 }
   0xc   :  { %p230_p6 = por %p229_p5, %p228_p4 }
   0xe   :  { %p231_p7 = pnand %p230_p6, %p224_p3 }
  0x10   :  { %234 = shalt.err (!%p231_p7)
}
  0x11   :  { %s286_s22 = smov 128   ;;  %s287_s23 = smov 8  }
  0x12   :  { %22 = dma.hbm_to_vmem [thread:$0]  %s365_s0, 256, %s17_s13, [#allocation4], %s286_s22, %s286_s22, %s287_s23  }
  0x13   :  { %s288_s26 = smov [#allocation6]   ;;  %s235_s30 = scalar_lea.hbm %s366_s1, 512 }
  0x14   :  { %s28_s27 = sshll.u32 %s288_s26, 4  ;;  %p236_p8 = scmp.ne.s32.totalorder %s366_s1, %s235_s30  ;;  %s29_s27 = int_to_ptr.vmem [resolvable:$true] %s28_s27 }
  0x15   :  { %p239_p9 = scmp.lt.u32.totalorder %s235_s30, %s366_s1 }
  0x17   :  { %p241_p10 = pnand %p239_p9, %p236_p8 }
  0x19   :  { %244 = shalt.err (!%p241_p10)
}
  0x1a   :  { %s245_s8 = scalar_lea.vmem %s29_s27, 512  ;;  %p250_p12 = scmp.lt.s32.totalorder %s29_s27, %s29_s27 }
  0x1b   :  { %p246_p11 = scmp.ne.s32.totalorder %s29_s27, %s245_s8  ;;  %p251_p13 = scmp.lt.s32.totalorder %s245_s8, %s245_s8 }
  0x1d   :  { %p252_p0 = por %p251_p13, %p250_p12 }
  0x1f   :  { %p253_p1 = pnand %p252_p0, %p246_p11 }
  0x21   :  { %256 = shalt.err (!%p253_p1)
}
  0x22   :  { %34 = dma.hbm_to_vmem [thread:$0]  %s366_s1, 512, %s29_s27, [#allocation7], %s286_s22, %s286_s22, %s287_s23  }
  0x23   :  { %279 = dma.done.wait [#allocation4], 256  }
  0x24   :  { %280 = vsyncadd [#allocation4], 4294967040 }
  0x25   :  { %281 = dma.done.wait [#allocation7], 512  }
  0x26   :  { %282 = vsyncadd [#allocation7], 4294966784  ;;  %vm47_vm0 = vcmask 785408   ;;  %v289_v0 = vmov 0.0   ;;  %vm58_vm1 = vcmask 261120   ;;  %v54_v1 = vld [vmem:[#allocation6] sm:$0xff] }
  0x27   :  { %49 = vst.msk [vmem:[#allocation2 + $0x8] sm:$0xff] %vm47_vm0, %v289_v0  ;;  %48 = vst.msk [vmem:[#allocation2] sm:$0xff] %vm47_vm0, %v289_v0  ;;  %v55_v2 = vld [vmem:[#allocation6 + $0x8] sm:$0xff]  ;;  %v56_v3 = vld [vmem:[#allocation6 + $0x10] sm:$0xff]  ;;  %s290_s11 = smov [#allocation8]  }
  0x28   :  { %v199_v4 = vpack.c.bf16 %v55_v2, %v54_v1  ;;  %v57_v5 = vld [vmem:[#allocation6 + $0x18] sm:$0xff]  ;;  %v52_v6 = vld [vmem:[#allocation3] sm:$0xff]  ;;  %v181_v15 = vld [vmem:[%s367_s2] ss:$0 sm:$0xff]  ;;  %s166_s12 = sshll.u32 %s290_s11, 4  ;;  %s167_s12 = int_to_ptr.vmem [resolvable:$true] %s166_s12 }
  0x29   :  { %v203_v7 = vpack.c.bf16 %v57_v5, %v56_v3  ;;  %196 = vmatprep.mubr.msk.f32.mxu0 %vm58_vm1, %v52_v6  ;;  %v53_v8 = vld [vmem:[#allocation3 + $0x8] sm:$0xff]  ;;  %s257_s13 = scalar_lea.vmem %s167_s12, 256  ;;  %p262_p3 = scmp.lt.s32.totalorder %s167_s12, %s167_s12 }
  0x2a   :  { %200 = vmatprep.subr.bf16.mxu0 %v199_v4  ;;  %p258_p2 = scmp.ne.s32.totalorder %s167_s12, %s257_s13  ;;  %p263_p4 = scmp.lt.s32.totalorder %s257_s13, %s257_s13 }
  0x2b   :  { %202 = vmatpush3.bf16.msra.mxu0 %v199_v4 }
  0x2c   :  { %204 = vmatprep.subr.bf16.mxu0 %v203_v7  ;;  %p264_p5 = por %p263_p4, %p262_p3 }
  0x2e   :  { %v51_v9 = vld [vmem:[#allocation2 + $0x8] sm:$0xff]  ;;  %v50_v10 = vld [vmem:[#allocation2] sm:$0xff]  ;;  %p265_p6 = pnand %p264_p5, %p258_p2 }
  0x2f   :  { %206 = vmatpush3.bf16.msra.mxu0 %v203_v7 }
  0x32   :  { %197 = vmatmul.mubr.msk.f32.vlgmr.msra.gmra.mrb[0].mxu0 %vm58_vm1, %v53_v8 }
 0x105   :  { %v198_v11 = vpop.f32.mrb[0].mxu0 }
 0x106   :  { %v141_v12 = vadd.f32 %v198_v11, %v51_v9  ;;  %v131_v13 = vpop.f32.mrb[1].mxu0 }
 0x107   :  { %v140_v14 = vadd.f32 %v131_v13, %v50_v10 }
 0x108   :  { %144 = vst.msk [vmem:[#allocation2 + $0x8] sm:$0xff] %vm47_vm0, %v141_v12 }
 0x109   :  { %143 = vst.msk [vmem:[#allocation2] sm:$0xff] %vm47_vm0, %v140_v14 }
 0x10f   :  { %v149_v16 = vld [vmem:[#allocation2 + $0x8] sm:$0xff] }
 0x110   :  { %v148_v17 = vld [vmem:[#allocation2] sm:$0xff]  ;;  %v158_v18 = vadd.f32 %v181_v15, %v149_v16 }
 0x111   :  { %v157_v19 = vadd.f32 %v181_v15, %v148_v17 }
 0x112   :  { %160 = vst.msk [vmem:[#allocation8 + $0x8] sm:$0xff] %vm47_vm0, %v158_v18 }
 0x113   :  { %159 = vst.msk [vmem:[#allocation8] sm:$0xff] %vm47_vm0, %v157_v19 }
 0x114   :  { %268 = shalt.err (!%p265_p6)
}
 0x115   :  { %s269_s15 = scalar_lea.hbm %s368_s3, 256 }
 0x116   :  { %p270_p7 = scmp.ne.s32.totalorder %s368_s3, %s269_s15  ;;  %p273_p8 = scmp.lt.u32.totalorder %s269_s15, %s368_s3 }
 0x118   :  { %p275_p9 = pnand %p273_p8, %p270_p7 }
 0x11a   :  { %278 = shalt.err (!%p275_p9)
}
 0x11b   :  { %172 = dma.vmem_to_hbm [thread:$0]  %s167_s12, 256, %s368_s3, [#allocation5], %s286_s22, %s286_s22, %s287_s23  }
 0x11c   :  { %283 = dma.done.wait [#allocation5], 256  }
 0x11d   :  { %284 = vsyncadd [#allocation5], 4294967040 }
 0x11e   :  { %176 = vsyncpa [#allocation4], 1 }
 0x11f   :  { %177 = vsyncpa [#allocation7], 1 }
 0x120   :  { %178 = vsyncpa [#allocation5], 1 }

</bundles_post_ra>
